<compile_context>
chip_gen: v7x
topology: tpu7x:2x2x1
jax: 0.10.0
libtpu: 0.0.40
codegen_flags: <defaults>
</compile_context>

<pallas_src>
import functools

import jax
import jax.numpy as jnp
from jax.experimental import pallas as pl
from jax.experimental.pallas import tpu as pltpu

_SUBLANE = 8
_LANE = 128
_F32 = 4  # bytes


def _round_up(v, m):
    return ((v + m - 1) // m) * m


def _vmem_budget_bytes():
    """Generation-aware VMEM budget (~70% of physical VMEM).

    v5e/v6e (128 MiB physical) -> ~89 MiB; v7x (64 MiB physical) -> ~44 MiB.
    Falls back to a conservative 40 MiB if the hardware query is unavailable.
    """
    try:
        cap = getattr(pltpu.get_tpu_info(), "vmem_capacity_bytes", None)
        if cap:
            return int(cap * 0.7)
    except Exception:
        pass
    return 40 * 1024 * 1024


def _plan_tiles(B, K, N, budget, max_k_tile=None):
    """Pick (tile_b, tile_k, vmem_limit_bytes).

    VMEM accounting assumes Pallas' default 2x buffering of every input and
    output block plus one f32 accumulator scratch:
      fixed   : weight block (tk, N) x2  +  bias row (1, N) x2
      per row : x row (tk) x2  +  loc row (N) x2  +  acc row (N) x1
    """
    # K tile: full K if the (double-buffered) weight block fits a quarter of
    # the budget, else the largest 128-multiple divisor of K that does.
    limit = min(K, max_k_tile) if max_k_tile else K
    w_budget = max(budget // 4, 2 * _F32 * _LANE * N)
    tk = K
    if not (limit >= K and 2 * _F32 * K * N <= w_budget):
        d = (limit // _LANE) * _LANE
        while d >= _LANE:
            if K % d == 0 and 2 * _F32 * d * N <= w_budget:
                tk = d
                break
            d -= _LANE
        # If no 128-multiple divisor fits, tk stays == K (weight resident) and
        # vmem_limit below is raised to cover it instead of failing.

    fixed = 2 * _F32 * (tk * N + N)
    per_row = _F32 * (2 * tk + 3 * N)
    rows = max(_SUBLANE, (budget - fixed) // per_row)
    # Keep >= 2 batch steps whenever B allows it so the "parallel" batch axis
    # shards across both TensorCores on v7x (neutral on v5e/v6e, 1 TC).
    rows = min(rows, _round_up(pl.cdiv(B, 2), _SUBLANE))
    tile_b = max(_SUBLANE, (rows // _SUBLANE) * _SUBLANE)

    needed = fixed + tile_b * per_row + (2 << 20)  # headroom for compiler scratch
    vmem_limit = int(min(max(budget, needed), 128 * 1024 * 1024))
    return tile_b, tk, vmem_limit


def _diag_gaussian_kernel(x_ref, w_ref, b_ref, loc_ref, acc_ref, *, bias_const):
    k = pl.program_id(1)

    @pl.when(k == 0)
    def _():
        acc_ref[...] = jnp.zeros_like(acc_ref)

    acc_ref[...] += jnp.dot(x_ref[...], w_ref[...],
                            preferred_element_type=jnp.float32)

    @pl.when(k == pl.num_programs(1) - 1)
    def _():
        # relu(xw + b) + c == max(xw + (b + c), c); bias_const was folded into
        # b once at parameter-prep time, so this is a single fused VPU max.
        loc_ref[...] = jnp.maximum(acc_ref[...] + b_ref[...], bias_const)


def prepare_diag_gaussian_params(w_torch, b, bias_const=20.0):
    """One-time parameter prep (do at init time, not per forward call).

    w_torch: (num_outputs, num_inputs)  -- torch Linear layout.
    Returns (w, b_folded): w transposed to (num_inputs, num_outputs) for a
    plain x @ w MXU matmul; bias_const folded into the linear bias.
    """
    w = jnp.asarray(w_torch, jnp.float32).T
    b_folded = jnp.asarray(b, jnp.float32).reshape(1, -1) + bias_const
    return w, b_folded


def diag_gaussian_forward(x, w, b_folded, logstd, bias_const=20.0,
                          max_k_tile=None):
    """Returns (loc, scale) of the FixedNormal produced by DiagGaussian.forward.

    x:        (B, num_inputs)            float32
    w:        (num_inputs, num_outputs)  float32 (from prepare_diag_gaussian_params)
    b_folded: (1, num_outputs)           float32 (bias + bias_const, pre-folded)
    logstd:   (1, num_outputs) or (num_outputs,) float32

    loc:   (B, num_outputs) float32
    scale: (B, num_outputs) float32 (lazy broadcast of a single exp(logstd) row)
    """
    B, K = x.shape
    N = w.shape[1]

    budget = _vmem_budget_bytes()
    tile_b, tk, vmem_limit = _plan_tiles(B, K, N, budget, max_k_tile)
    grid = (pl.cdiv(B, tile_b), K // tk)

    kernel = functools.partial(_diag_gaussian_kernel,
                               bias_const=float(bias_const))

    cost = pl.CostEstimate(
        flops=2 * B * K * N,
        transcendentals=0,
        bytes_accessed=_F32 * (B * K + K * N + N + B * N))

    loc = pl.pallas_call(
        kernel,
        out_shape=jax.ShapeDtypeStruct((B, N), jnp.float32),
        grid_spec=pltpu.PrefetchScalarGridSpec(
            num_scalar_prefetch=0,
            grid=grid,
            in_specs=[
                # x: (batch tile, K tile); double-buffered by Pallas.
                pl.BlockSpec((tile_b, tk), lambda i, k: (i, k)),
                # weight: one K tile per inner step (resident when K fits).
                pl.BlockSpec((tk, N), lambda i, k: (k, 0)),
                # folded bias row: constant block.
                pl.BlockSpec((1, N), lambda i, k: (0, 0)),
            ],
            # Full last dim (= num_outputs) -> no lane padding written to HBM.
            out_specs=pl.BlockSpec((tile_b, N), lambda i, k: (i, 0)),
            scratch_shapes=[pltpu.VMEM((tile_b, N), jnp.float32)],
        ),
        compiler_params=pltpu.CompilerParams(
            dimension_semantics=("parallel", "arbitrary"),
            vmem_limit_bytes=vmem_limit),
        cost_estimate=cost,
    )(x.astype(jnp.float32), w, b_folded)

    # scale is batch-invariant: one exp on a (1, N) row, broadcast lazily to
    # the PyTorch shape contract (B, N); XLA fuses the broadcast downstream.
    scale_row = jnp.exp(jnp.asarray(logstd, jnp.float32).reshape(1, -1))
    scale = jnp.broadcast_to(scale_row, (B, N))
    return loc, scale


# ---- FixedNormal helpers (plain JAX glue on the kernel outputs) -------------
def fixed_normal_log_probs(loc, scale, actions):
    var = scale ** 2
    logp = (-((actions - loc) ** 2) / (2.0 * var)
            - jnp.log(scale) - 0.5 * jnp.log(2.0 * jnp.pi))
    return jnp.sum(logp, axis=-1, keepdims=True)


def fixed_normal_entropy(loc, scale):
    ent = 0.5 + 0.5 * jnp.log(2.0 * jnp.pi) + jnp.log(scale)
    return jnp.sum(jnp.broadcast_to(ent, loc.shape), axis=-1)


def fixed_normal_mode(loc, scale):
    return loc


if __name__ == "__main__":
    key = jax.random.PRNGKey(0)
    k1, k2, k3, k4 = jax.random.split(key, 4)

    # --- case 1: shapes implied by the module (Linear on 2-D input) ---------
    B, num_inputs, num_outputs = 8, 32, 16
    bias_const = 20.0

    x = jax.random.normal(k1, (B, num_inputs), jnp.float32)
    # torch layout: weight (num_outputs, num_inputs) orthogonal, bias zeros,
    # logstd (AddBias) zeros.
    w_torch = jax.nn.initializers.orthogonal()(k2, (num_outputs, num_inputs),
                                               jnp.float32)
    b_torch = jnp.zeros((num_outputs,), jnp.float32)
    logstd = jnp.zeros((1, num_outputs), jnp.float32)

    w, b_folded = prepare_diag_gaussian_params(w_torch, b_torch, bias_const)

    loc, scale = jax.block_until_ready(
        diag_gaussian_forward(x, w, b_folded, logstd, bias_const))

    ref_loc = jnp.maximum(x @ w_torch.T + b_torch, 0.0) + bias_const
    ref_scale = jnp.broadcast_to(jnp.exp(logstd), (B, num_outputs))
    assert loc.shape == (B, num_outputs) and scale.shape == (B, num_outputs)
    assert jnp.allclose(loc, ref_loc, atol=1e-5, rtol=1e-5)
    assert jnp.allclose(scale, ref_scale, atol=1e-6, rtol=1e-6)

    # --- case 2: ragged batch (no wrapper padding; OOB output rows dropped) -
    B2 = 13
    x2 = jax.random.normal(k3, (B2, num_inputs), jnp.float32)
    loc2, scale2 = jax.block_until_ready(
        diag_gaussian_forward(x2, w, b_folded, logstd, bias_const))
    ref_loc2 = jnp.maximum(x2 @ w_torch.T + b_torch, 0.0) + bias_const
    assert loc2.shape == (B2, num_outputs)
    assert jnp.allclose(loc2, ref_loc2, atol=1e-5, rtol=1e-5)

    # --- case 3: exercise the K-tiled accumulator path at small shapes ------
    K3 = 256
    x3 = jax.random.normal(k4, (B, K3), jnp.float32)
    w3_torch = jax.random.normal(k2, (num_outputs, K3), jnp.float32) * 0.05
    w3, b3_folded = prepare_diag_gaussian_params(w3_torch, b_torch, bias_const)
    loc3, _ = jax.block_until_ready(
        diag_gaussian_forward(x3, w3, b3_folded, logstd, bias_const,
                              max_k_tile=128))
    ref_loc3 = jnp.maximum(x3 @ w3_torch.T + b_torch, 0.0) + bias_const
    assert jnp.allclose(loc3, ref_loc3, atol=1e-4, rtol=1e-5)

    # Exercise the distribution helpers (mode / entropy / log_probs).
    _ = fixed_normal_mode(loc, scale)
    _ = fixed_normal_entropy(loc, scale)
    _ = fixed_normal_log_probs(loc, scale, jnp.ones_like(loc))

    # TODO(synk): FixedNormal.sample() (stochastic RNG draw + ReLU) is done in
    # plain JAX if needed; it is not part of the deterministic forward pass.
    print("KERNEL_OK")
</pallas_src>

<mosaic_0001>
module attributes {stable_mosaic.version = 11 : i64} {
  func.func @_diag_gaussian_kernel(%arg0: i32, %arg1: i32, %arg2: memref<8x32xf32, #tpu.memory_space<vmem>>, %arg3: memref<32x16xf32, #tpu.memory_space<vmem>>, %arg4: memref<1x16xf32, #tpu.memory_space<vmem>>, %arg5: memref<8x16xf32, #tpu.memory_space<vmem>>, %arg6: memref<8x16xf32, #tpu.memory_space<vmem>>) attributes {dimension_semantics = [#tpu.dimension_semantics<parallel>, #tpu.dimension_semantics<arbitrary>], iteration_bounds = array<i64: 1, 1>, scalar_prefetch = 0 : i64, scratch_operands = 1 : i64, tpu.core_type = #tpu.core_type<tc>, window_params = [{transform_indices = @transform_0, window_bounds = array<i64: 8, 32>}, {transform_indices = @transform_1, window_bounds = array<i64: 32, 16>}, {pipeline_mode = #tpu.pipeline_mode<synchronous>, transform_indices = @transform_2, window_bounds = array<i64: 1, 16>}, {transform_indices = @transform_3, window_bounds = array<i64: 8, 16>}]} {
    %c0_i32 = arith.constant 0 : i32
    %0 = arith.cmpi eq, %arg1, %c0_i32 : i32
    %1 = arith.extui %0 : i1 to i32
    %c0_i32_0 = arith.constant 0 : i32
    %2 = arith.cmpi ne, %1, %c0_i32_0 : i32
    scf.if %2 {
      %cst_10 = arith.constant 0.000000e+00 : f32
      %12 = vector.broadcast %cst_10 : f32 to vector<8x16xf32>
      %c0_11 = arith.constant 0 : index
      %c0_12 = arith.constant 0 : index
      %13 = vector.load %arg6[%c0_11, %c0_12] : memref<8x16xf32, #tpu.memory_space<vmem>>, vector<8x16xf32>
      tpu.vector_store %arg6[%c0_11, %c0_12], %12 {strides = array<i32>} : memref<8x16xf32, #tpu.memory_space<vmem>>, vector<8x16xf32>,
    } else {
    }
    %c0 = arith.constant 0 : index
    %c0_1 = arith.constant 0 : index
    %3 = vector.load %arg6[%c0, %c0_1] : memref<8x16xf32, #tpu.memory_space<vmem>>, vector<8x16xf32>
    %c0_2 = arith.constant 0 : index
    %c0_3 = arith.constant 0 : index
    %4 = vector.load %arg2[%c0_2, %c0_3] : memref<8x32xf32, #tpu.memory_space<vmem>>, vector<8x32xf32>
    %c0_4 = arith.constant 0 : index
    %c0_5 = arith.constant 0 : index
    %5 = vector.load %arg3[%c0_4, %c0_5] : memref<32x16xf32, #tpu.memory_space<vmem>>, vector<32x16xf32>
    %cst = arith.constant dense<0.000000e+00> : vector<8x16xf32>
    %6 = tpu.matmul %4, %5, %cst {dimension_numbers = #tpu.dot_dimension_numbers<[1], [0], [0], [1], [0, 0, 1, 1], [], []>} : vector<8x32xf32>, vector<32x16xf32>, vector<8x16xf32> -> vector<8x16xf32>
    %7 = arith.addf %3, %6 : vector<8x16xf32>
    %c0_6 = arith.constant 0 : index
    %c0_7 = arith.constant 0 : index
    %8 = vector.load %arg6[%c0_6, %c0_7] : memref<8x16xf32, #tpu.memory_space<vmem>>, vector<8x16xf32>
    tpu.vector_store %arg6[%c0_6, %c0_7], %7 {strides = array<i32>} : memref<8x16xf32, #tpu.memory_space<vmem>>, vector<8x16xf32>,
    %c0_i32_8 = arith.constant 0 : i32
    %9 = arith.cmpi eq, %arg1, %c0_i32_8 : i32
    %10 = arith.extui %9 : i1 to i32
    %c0_i32_9 = arith.constant 0 : i32
    %11 = arith.cmpi ne, %10, %c0_i32_9 : i32
    scf.if %11 {
      %c0_10 = arith.constant 0 : index
      %c0_11 = arith.constant 0 : index
      %12 = vector.load %arg6[%c0_10, %c0_11] : memref<8x16xf32, #tpu.memory_space<vmem>>, vector<8x16xf32>
      %c0_12 = arith.constant 0 : index
      %c0_13 = arith.constant 0 : index
      %13 = vector.load %arg4[%c0_12, %c0_13] : memref<1x16xf32, #tpu.memory_space<vmem>>, vector<1x16xf32>
      %14 = vector.broadcast %13 : vector<1x16xf32> to vector<8x16xf32>
      %15 = arith.addf %12, %14 : vector<8x16xf32>
      %cst_14 = arith.constant 2.000000e+01 : f32
      %16 = vector.broadcast %cst_14 : f32 to vector<8x16xf32>
      %17 = arith.maximumf %15, %16 : vector<8x16xf32>
      %c0_15 = arith.constant 0 : index
      %c0_16 = arith.constant 0 : index
      %18 = vector.load %arg5[%c0_15, %c0_16] : memref<8x16xf32, #tpu.memory_space<vmem>>, vector<8x16xf32>
      tpu.vector_store %arg5[%c0_15, %c0_16], %17 {strides = array<i32>} : memref<8x16xf32, #tpu.memory_space<vmem>>, vector<8x16xf32>,
    } else {
    }
    return
  }
  func.func @transform_0(%arg0: i32, %arg1: i32) -> (i32, i32) {
    %c0_i32 = arith.constant 0 : i32
    return %arg0, %arg1 : i32, i32
  }
  func.func @transform_1(%arg0: i32, %arg1: i32) -> (i32, i32) {
    %c0_i32 = arith.constant 0 : i32
    %c0_i32_0 = arith.constant 0 : i32
    return %arg1, %c0_i32 : i32, i32
  }
  func.func @transform_2(%arg0: i32, %arg1: i32) -> (i32, i32) {
    %c0_i32 = arith.constant 0 : i32
    %c0_i32_0 = arith.constant 0 : i32
    %c0_i32_1 = arith.constant 0 : i32
    return %c0_i32, %c0_i32_0 : i32, i32
  }
  func.func @transform_3(%arg0: i32, %arg1: i32) -> (i32, i32) {
    %c0_i32 = arith.constant 0 : i32
    %c0_i32_0 = arith.constant 0 : i32
    return %arg0, %c0_i32 : i32, i32
  }
}

</mosaic_0001>

<bundles_post_ra>
// kernel: tpu_custom_call.1
= control target key start
LH: loop header
LB: loop body
LE: loop exit
PB: predicated region body
PF: predicated region fallthrough
CT: control target
= control target key end

     0   :  { %vm19_vm0 = vcmask 130048   ;;  %v184_v3 = vmov 0.0|0.0   ;;  %v185_v6 = vmov 0.0   ;;  %s241_s0 = inlined_call_operand.vmem [shape: f32[8,32], index: 0, kind: input, shape index: {}]   ;;  %s242_s1 = inlined_call_operand.vmem [shape: f32[32,16], index: 1, kind: input, shape index: {}]   ;;  %s243_s2 = inlined_call_operand.vmem [shape: f32[1,16], index: 2, kind: input, shape index: {}]   ;;  %s244_s3 = inlined_call_operand.hbm [shape: f32[8,16], index: 3, kind: output, shape index: {}]  }
   0x1   :  { %v23_v0 = vld [vmem:[%s242_s1] sm:$0xff]  ;;  %v24_v1 = vld [vmem:[%s242_s1 + $0x8] sm:$0xff]  ;;  %v25_v2 = vld [vmem:[%s242_s1 + $0x10] sm:$0xff]  ;;  %150 = vmatprep.subr.bf16.mxu0 %v184_v3  ;;  %20 = vst.msk [vmem:[#allocation2] sm:$0xff] %vm19_vm0, %v185_v6 }
   0x2   :  { %v151_v4 = vpack.c.bf16 %v24_v1, %v23_v0  ;;  %v26_v5 = vld [vmem:[%s242_s1 + $0x18] sm:$0xff] }
   0x3   :  { %8 = vsyncpa [#allocation4], 0  ;;  %vm186_vm1 = vmmov 0   ;;  %v154_v7 = vpack.c.bf16 %v26_v5, %v25_v2  ;;  %v22_v8 = vld [vmem:[%s241_s0] sm:$0xff]  ;;  %vm27_vm2 = vcmask 261120   ;;  %s187_s23 = smov [#allocation3]  }
   0x4   :  { %147 = vmatprep.mubr.msk.f32.mxu0 %vm186_vm1, %v185_v6  ;;  %152 = vmatpush3.bf16.msra.mxu0 %v151_v4  ;;  %v133_v13 = vld [vmem:[%s243_s2] ss:$0 sm:$0xff]  ;;  %s124_s24 = sshll.u32 %s187_s23, 4  ;;  %s125_s24 = int_to_ptr.vmem [resolvable:$true] %s124_s24 }
   0x5   :  { %153 = vmatprep.subr.bf16.mxu0 %v184_v3  ;;  %s160_s0 = scalar_lea.vmem %s125_s24, 128  ;;  %p165_p1 = scmp.lt.s32.totalorder %s125_s24, %s125_s24 }
   0x6   :  { %p161_p0 = scmp.ne.s32.totalorder %s125_s24, %s160_s0  ;;  %p166_p2 = scmp.lt.s32.totalorder %s160_s0, %s160_s0 }
   0x8   :  { %155 = vmatpush3.bf16.msra.mxu0 %v154_v7  ;;  %v21_v9 = vld [vmem:[#allocation2] sm:$0xff]  ;;  %p167_p3 = por %p166_p2, %p165_p1 }
   0xa   :  { %p168_p4 = pnand %p167_p3, %p161_p0 }
   0xb   :  { %148 = vmatmul.mubr.msk.f32.vlgmr.msra.gmra.mrb[0].mxu0 %vm27_vm2, %v22_v8 }
  0xde   :  { %v97_v10 = vpop.f32.mrb[0].mxu0 }
  0xdf   :  { %v101_v11 = vadd.f32 %v97_v10, %v21_v9  ;;  %v149_v12 = vpop.f32.mrb[1].mxu0 }
  0xe1   :  { %103 = vst.msk [vmem:[#allocation2] sm:$0xff] %vm19_vm0, %v101_v11 }
  0xe8   :  { %v107_v14 = vld [vmem:[#allocation2] sm:$0xff] }
  0xe9   :  { %v115_v15 = vadd.f32 %v133_v13, %v107_v14 }
  0xeb   :  { %v116_v16 = vmax.f32 %v115_v15, 20.0 }
  0xed   :  { %117 = vst.msk [vmem:[#allocation3] sm:$0xff] %vm19_vm0, %v116_v16 }
  0xee   :  { %171 = shalt.err (!%p168_p4)
}
  0xef   :  { %s172_s27 = scalar_lea.hbm %s244_s3, 128 }
  0xf0   :  { %p173_p5 = scmp.ne.s32.totalorder %s244_s3, %s172_s27  ;;  %p176_p6 = scmp.lt.u32.totalorder %s172_s27, %s244_s3 }
  0xf2   :  { %p178_p7 = pnand %p176_p6, %p173_p5 }
  0xf4   :  { %181 = shalt.err (!%p178_p7)
}
  0xf5   :  { %127 = dma.vmem_to_hbm [thread:$0]  %s125_s24, 128, %s244_s3, [#allocation4]  }
  0xf6   :  { %182 = dma.done.wait [#allocation4], 128  }
  0xf7   :  { %183 = vsyncadd [#allocation4], 4294967168 }
  0xf8   :  { %131 = vsyncpa [#allocation4], 1 }

</bundles_post_ra>
